<compile_context>
chip_gen: v7x
topology: tpu7x:2x2x1
jax: 0.10.0
libtpu: 0.0.40
codegen_flags: <defaults>
</compile_context>

<pallas_src>
import functools

import jax
import jax.numpy as jnp
from jax.experimental import pallas as pl
from jax.experimental.pallas import tpu as pltpu


def _round_up(v, m):
    return ((v + m - 1) // m) * m


def _staticnet_kernel(x_ref, w_ref, b_ref, o_ref, acc_ref):
    """One (row-tile, k-tile) step of  out = x @ Wp + bp  (pool & T pre-folded).

    Grid = (row tiles 'parallel', D reduction tiles 'arbitrary', last).
      x_ref:   (tn, tk)  bf16  activation tile
      w_ref:   (tk, C)   bf16  folded weight tile
      b_ref:   (1,  C)   f32   folded bias
      o_ref:   (tn, C)   f32   output tile (resident across k)
      acc_ref: (tn, C)   f32   scratch accumulator
    """
    k = pl.program_id(1)

    @pl.when(k == 0)
    def _():
        acc_ref[...] = jnp.zeros_like(acc_ref)

    acc_ref[...] += jnp.dot(x_ref[...], w_ref[...],
                            preferred_element_type=jnp.float32)

    @pl.when(k == pl.num_programs(1) - 1)
    def _():
        o_ref[...] = acc_ref[...] + b_ref[...]


def prepare_params(fc_w, fc_b, T, num_classes=10, block_k=512,
                   dtype=jnp.bfloat16):
    """One-time weight-side work (hoisted out of the per-call path).

    Folds boost = AvgPool1d(10,10) and the T-step sum into fc:
        Wp = T * fc_w @ P,   bp = T * fc_b @ P
    pads the contraction dim D to a multiple of the reduction tile, and casts
    the weight to bf16 for the MXU.  Returns (wp[(Dp, C)], bp[(1, C)]).
    """
    D, F = fc_w.shape
    assert F == 10 * num_classes
    pool = jnp.repeat(jnp.eye(num_classes, dtype=jnp.float32), 10, axis=0) / 10.0
    wp = (fc_w.astype(jnp.float32) @ pool) * jnp.float32(T)            # (D, C)
    bp = ((fc_b.astype(jnp.float32) @ pool) * jnp.float32(T))[None, :]  # (1, C)

    tk = min(block_k, _round_up(D, 128))          # effective reduction tile
    Dp = _round_up(D, tk)
    if Dp != D:
        wp = jnp.zeros((Dp, num_classes), jnp.float32).at[:D].set(wp)
    return wp.astype(dtype), bp


@functools.partial(jax.jit, static_argnames=("block_n", "block_k"))
def staticnet_forward(x, wp, bp, block_n=256, block_k=512):
    """x: (N, C, H, W) static frame; wp/bp from prepare_params.
    Returns (N, num_classes) f32 spike counts = T * boost(fc(flatten(x)))."""
    N = x.shape[0]
    Dp, C = wp.shape

    # Per-call glue is only: flatten, bf16 cast, (rarely) zero-pad.
    x2d = x.reshape(N, -1).astype(wp.dtype)
    D = x2d.shape[1]
    if Dp != D:
        x2d = jnp.pad(x2d, ((0, 0), (0, Dp - D)))

    # Row tiling: full-N block when small (block == full dim is allowed even
    # if not 8-aligned); otherwise tile + pad so 'parallel' shards across TCs.
    if N <= block_n:
        tn, Np = N, N
    else:
        tn = block_n
        Np = _round_up(N, tn)
        if Np != N:
            x2d = jnp.pad(x2d, ((0, Np - N), (0, 0)))

    tk = min(block_k, Dp)
    grid = (Np // tn, Dp // tk)

    out = pl.pallas_call(
        _staticnet_kernel,
        out_shape=jax.ShapeDtypeStruct((Np, C), jnp.float32),
        grid_spec=pltpu.PrefetchScalarGridSpec(
            num_scalar_prefetch=0,
            grid=grid,
            in_specs=[
                pl.BlockSpec((tn, tk), lambda i, k: (i, k)),   # activations
                pl.BlockSpec((tk, C), lambda i, k: (k, 0)),    # folded weight
                pl.BlockSpec((1, C), lambda i, k: (0, 0)),     # folded bias
            ],
            out_specs=pl.BlockSpec((tn, C), lambda i, k: (i, 0)),
            scratch_shapes=[pltpu.VMEM((tn, C), jnp.float32)],
        ),
        compiler_params=pltpu.CompilerParams(
            dimension_semantics=("parallel", "arbitrary")),
    )(x2d, wp, bp)

    return out[:N] if Np != N else out


def reference_forward(x, fc_w, fc_b, T, num_classes=10):
    """Pure-JAX f32 reference mirroring the PyTorch forward loop literally."""
    N = x.shape[0]
    x2d = x.reshape(N, -1)
    y = x2d @ fc_w + fc_b                           # fc(conv(static_conv(x)))
    y = y.reshape(N, num_classes, 10).mean(-1)      # boost: AvgPool1d(10, 10)
    out = y
    for _ in range(1, T):                           # same static x each step
        out = out + y
    return out


if __name__ == "__main__":
    # Small deterministic shapes consistent with the module's forward.
    N, C, H, W = 2, 4, 16, 16        # static frame
    T = 8                             # timesteps (module hyperparameter)
    num_classes = 10
    D = C * H * W
    F = 10 * num_classes

    key = jax.random.PRNGKey(0)
    kx, kw, kb = jax.random.split(key, 3)
    x = jax.random.normal(kx, (N, C, H, W), dtype=jnp.float32)
    fc_w = jax.random.normal(kw, (D, F), dtype=jnp.float32) * (1.0 / jnp.sqrt(D))
    fc_b = jax.random.normal(kb, (F,), dtype=jnp.float32) * 0.01

    # One-time init-path work (pool/T fold, pad, bf16 cast).
    wp, bp = prepare_params(fc_w, fc_b, T, num_classes=num_classes, block_k=512)

    out = staticnet_forward(x, wp, bp, block_n=256, block_k=512)
    out = jax.block_until_ready(out)

    ref = reference_forward(x, fc_w, fc_b, T, num_classes)
    assert out.shape == (N, num_classes)
    # bf16 matmul operands vs f32 reference -> percent-level tolerance.
    max_err = float(jnp.max(jnp.abs(out - ref)))
    assert jnp.allclose(out, ref, atol=1e-1, rtol=5e-2), (
        f"mismatch vs reference, max abs err = {max_err}")

    print("KERNEL_OK")
</pallas_src>

<mosaic_0001>
module attributes {stable_mosaic.version = 11 : i64} {
  func.func @_staticnet_kernel(%arg0: i32, %arg1: i32, %arg2: memref<2x512xbf16, #tpu.memory_space<vmem>>, %arg3: memref<512x10xbf16, #tpu.memory_space<vmem>>, %arg4: memref<1x10xf32, #tpu.memory_space<vmem>>, %arg5: memref<2x10xf32, #tpu.memory_space<vmem>>, %arg6: memref<2x10xf32, #tpu.memory_space<vmem>>) attributes {dimension_semantics = [#tpu.dimension_semantics<parallel>, #tpu.dimension_semantics<arbitrary>], iteration_bounds = array<i64: 1, 2>, scalar_prefetch = 0 : i64, scratch_operands = 1 : i64, tpu.core_type = #tpu.core_type<tc>, window_params = [{transform_indices = @transform_0, window_bounds = array<i64: 2, 512>}, {transform_indices = @transform_1, window_bounds = array<i64: 512, 10>}, {pipeline_mode = #tpu.pipeline_mode<synchronous>, transform_indices = @transform_2, window_bounds = array<i64: 1, 10>}, {transform_indices = @transform_3, window_bounds = array<i64: 2, 10>}]} {
    %c0_i32 = arith.constant 0 : i32
    %0 = arith.cmpi eq, %arg1, %c0_i32 : i32
    %1 = arith.extui %0 : i1 to i32
    %c0_i32_0 = arith.constant 0 : i32
    %2 = arith.cmpi ne, %1, %c0_i32_0 : i32
    scf.if %2 {
      %cst_9 = arith.constant 0.000000e+00 : f32
      %12 = vector.broadcast %cst_9 : f32 to vector<2x10xf32>
      %c0_10 = arith.constant 0 : index
      %c0_11 = arith.constant 0 : index
      %13 = vector.load %arg6[%c0_10, %c0_11] : memref<2x10xf32, #tpu.memory_space<vmem>>, vector<2x10xf32>
      tpu.vector_store %arg6[%c0_10, %c0_11], %12 {strides = array<i32>} : memref<2x10xf32, #tpu.memory_space<vmem>>, vector<2x10xf32>,
    } else {
    }
    %c0 = arith.constant 0 : index
    %c0_1 = arith.constant 0 : index
    %3 = vector.load %arg6[%c0, %c0_1] : memref<2x10xf32, #tpu.memory_space<vmem>>, vector<2x10xf32>
    %c0_2 = arith.constant 0 : index
    %c0_3 = arith.constant 0 : index
    %4 = vector.load %arg2[%c0_2, %c0_3] : memref<2x512xbf16, #tpu.memory_space<vmem>>, vector<2x512xbf16>
    %c0_4 = arith.constant 0 : index
    %c0_5 = arith.constant 0 : index
    %5 = vector.load %arg3[%c0_4, %c0_5] : memref<512x10xbf16, #tpu.memory_space<vmem>>, vector<512x10xbf16>
    %cst = arith.constant dense<0.000000e+00> : vector<2x10xf32>
    %6 = tpu.matmul %4, %5, %cst {dimension_numbers = #tpu.dot_dimension_numbers<[1], [0], [0], [1], [0, 0, 1, 1], [], []>} : vector<2x512xbf16>, vector<512x10xbf16>, vector<2x10xf32> -> vector<2x10xf32>
    %7 = arith.addf %3, %6 : vector<2x10xf32>
    %c0_6 = arith.constant 0 : index
    %c0_7 = arith.constant 0 : index
    %8 = vector.load %arg6[%c0_6, %c0_7] : memref<2x10xf32, #tpu.memory_space<vmem>>, vector<2x10xf32>
    tpu.vector_store %arg6[%c0_6, %c0_7], %7 {strides = array<i32>} : memref<2x10xf32, #tpu.memory_space<vmem>>, vector<2x10xf32>,
    %c1_i32 = arith.constant 1 : i32
    %9 = arith.cmpi eq, %arg1, %c1_i32 : i32
    %10 = arith.extui %9 : i1 to i32
    %c0_i32_8 = arith.constant 0 : i32
    %11 = arith.cmpi ne, %10, %c0_i32_8 : i32
    scf.if %11 {
      %c0_9 = arith.constant 0 : index
      %c0_10 = arith.constant 0 : index
      %12 = vector.load %arg6[%c0_9, %c0_10] : memref<2x10xf32, #tpu.memory_space<vmem>>, vector<2x10xf32>
      %c0_11 = arith.constant 0 : index
      %c0_12 = arith.constant 0 : index
      %13 = vector.load %arg4[%c0_11, %c0_12] : memref<1x10xf32, #tpu.memory_space<vmem>>, vector<1x10xf32>
      %14 = vector.broadcast %13 : vector<1x10xf32> to vector<2x10xf32>
      %15 = arith.addf %12, %14 : vector<2x10xf32>
      %c0_13 = arith.constant 0 : index
      %c0_14 = arith.constant 0 : index
      %16 = vector.load %arg5[%c0_13, %c0_14] : memref<2x10xf32, #tpu.memory_space<vmem>>, vector<2x10xf32>
      tpu.vector_store %arg5[%c0_13, %c0_14], %15 {strides = array<i32>} : memref<2x10xf32, #tpu.memory_space<vmem>>, vector<2x10xf32>,
    } else {
    }
    return
  }
  func.func @transform_0(%arg0: i32, %arg1: i32) -> (i32, i32) {
    %c0_i32 = arith.constant 0 : i32
    return %arg0, %arg1 : i32, i32
  }
  func.func @transform_1(%arg0: i32, %arg1: i32) -> (i32, i32) {
    %c0_i32 = arith.constant 0 : i32
    %c0_i32_0 = arith.constant 0 : i32
    return %arg1, %c0_i32 : i32, i32
  }
  func.func @transform_2(%arg0: i32, %arg1: i32) -> (i32, i32) {
    %c0_i32 = arith.constant 0 : i32
    %c0_i32_0 = arith.constant 0 : i32
    %c0_i32_1 = arith.constant 0 : i32
    return %c0_i32, %c0_i32_0 : i32, i32
  }
  func.func @transform_3(%arg0: i32, %arg1: i32) -> (i32, i32) {
    %c0_i32 = arith.constant 0 : i32
    %c0_i32_0 = arith.constant 0 : i32
    return %arg0, %c0_i32 : i32, i32
  }
}

</mosaic_0001>

<bundles_post_ra>
// kernel: staticnet_forward.1
= control target key start
LH: loop header
LB: loop body
LE: loop exit
PB: predicated region body
PF: predicated region fallthrough
CT: control target
= control target key end

     0   :  { %8 = vsyncpa [#allocation4], 0  ;;  %s907_s12 = smov 0   ;;  %s909_s13 = smov 0   ;;  %s1020_s0 = inlined_call_operand.vmem [shape: bf16[2,1024], index: 0, kind: input, shape index: {}]   ;;  %s1021_s1 = inlined_call_operand.vmem [shape: bf16[1024,10], index: 1, kind: input, shape index: {}]   ;;  %s1022_s2 = inlined_call_operand.vmem [shape: f32[1,10], index: 2, kind: input, shape index: {}]   ;;  %s1023_s3 = inlined_call_operand.hbm [shape: f32[2,10], index: 3, kind: output, shape index: {}]  }
   0x1   :  { %s911_s14 = smov 0  }
   0x2 LB: > { %s674_s15 = sadd.s32 4294967295, %s882_s14   ;;  %s23_s16 = sadd.s32 1, %s878_s13  ;;  %s882_s14 = sphi %s911_s14, %s14_s14   ;;  %s878_s13 = sphi %s909_s13, %s1026_s13   ;;  %s874_s12 = sphi %s907_s12, %s1025_s12  }
   0x3   : > { %p24_p0 = scmp.ge.s32.totalorder %s23_s16, 2  ;;  %p677_p1 = scmp.ge.s32.totalorder %s882_s14, 1 }
   0x4   : > { %p167_p2 = scmp.lt.s32.totalorder %s882_s14, 3 }
   0x5   : > { %s1028_s16 = smov (%p24_p0, %s23_s16), 0 }
   0x6   : > { %p168_p3 = pnand %p677_p1, %p167_p2 }
   0x7   : > { %s678_s17 = sshll.u32 (!%p168_p3), %s874_s12, 2  ;;  %s679_s18 = sshll.u32 (!%p168_p3), %s874_s12, 6 }
   0x8   : > { %171 = sbr.rel (%p168_p3) target bundleno = 314 (0x13a), region = 32  ;;  %p197_p4 = scmp.lt.s32.totalorder (!%p168_p3), %s678_s17, 7 }
   0x9   : > { %p204_p5 = scmp.lt.s32.totalorder (!%p168_p3), %s679_s18, 127  ;;  %p681_p6 = scmp.ne.s32.totalorder (!%p168_p3), %s874_s12, 0 }
   0xf   : > { %s1030_s17 = smov (!%p197_p4, %s678_s17), 7  ;;  %s1032_s18 = smov (!%p204_p5, %s679_s18), 127 }
  0x10   : > { %s201_s21 = scalar_lea.vmem %s1020_s0, %s1030_s17  ;;  %s680_s22 = sshll.u32 %s1032_s18, 2  ;;  %vm214_vm0 = vcmask (!%p681_p6), 74752   ;;  %v884_v0 = vmov (!%p681_p6), 0.0  }
  0x11   : > { %s939_s25 = scalar_lea.vmem %s1021_s1, %s680_s22  ;;  %213 = sbr.rel (%p681_p6) target bundleno = 24 (0x18), region = 36  ;;  %215 = vst.msk [vmem:[#allocation2] sm:$0x3] (!%p681_p6), %vm214_vm0, %v884_v0 }
  0x18 PF: > { %v798_v1 = vld [vmem:[%s939_s25 + $0x40] sm:$0xff]   ;;  %v802_v5 = vld [vmem:[%s939_s25 + $0x48] sm:$0xff]   ;;  %v806_v9 = vld [vmem:[%s939_s25 + $0x50] sm:$0xff]   ;;  %v294_v31 = vlaneseq  ;;  %v885_v35 = vmov 1966171168   ;;  %vm584_vm1 = vcmask 74752  }
  0x19   : > { %v799_v2 = vld [vmem:[%s939_s25 + $0xc0] sm:$0xff]   ;;  %721 = vmatprep.subr.bf16.mxu0 %v798_v1  ;;  %v803_v6 = vld [vmem:[%s939_s25 + $0xc8] sm:$0xff]   ;;  %v807_v10 = vld [vmem:[%s939_s25 + $0xd0] sm:$0xff]   ;;  %v292_v36 = vunpack.c.l.s4 %v885_v35  ;;  %p715_p7 = scmp.ne.s32.totalorder %s874_s12, 1 }
  0x1a   : > { %v800_v3 = vld [vmem:[%s939_s25] sm:$0xff]   ;;  %743 = vmatprep.subr.bf16.mxu1 %v799_v2  ;;  %v804_v7 = vld [vmem:[%s939_s25 + $0x8] sm:$0xff]   ;;  %v808_v11 = vld [vmem:[%s939_s25 + $0x10] sm:$0xff]   ;;  %v295_v37 = vshrl.u32 %v294_v31, 7 }
  0x1b   : > { %v801_v4 = vld [vmem:[%s939_s25 + $0x80] sm:$0xff]   ;;  %722 = vmatpush3.bf16.msra.mxu0 %v800_v3  ;;  %v805_v8 = vld [vmem:[%s939_s25 + $0x88] sm:$0xff]   ;;  %v809_v12 = vld [vmem:[%s939_s25 + $0x90] sm:$0xff]   ;;  %v293_v39 = vunpack.c.0.s8 %v292_v36 }
  0x1c   : > { %744 = vmatpush3.bf16.msra.mxu1 %v801_v4  ;;  %723 = vmatprep.subr.bf16.mxu0 %v802_v5  ;;  %v810_v13 = vld [vmem:[%s939_s25 + $0x58] sm:$0xff]   ;;  %v814_v17 = vld [vmem:[%s939_s25 + $0x60] sm:$0xff]   ;;  %v818_v21 = vld [vmem:[%s939_s25 + $0x68] sm:$0xff]  }
  0x1d   : > { %745 = vmatprep.subr.bf16.mxu1 %v803_v6  ;;  %v811_v14 = vld [vmem:[%s939_s25 + $0xd8] sm:$0xff]   ;;  %v815_v18 = vld [vmem:[%s939_s25 + $0xe0] sm:$0xff]   ;;  %v819_v22 = vld [vmem:[%s939_s25 + $0xe8] sm:$0xff]   ;;  %v296_v40 = vsub.s32 %v293_v39, %v295_v37 }
  0x1e   : > { %v812_v15 = vld [vmem:[%s939_s25 + $0x18] sm:$0xff]   ;;  %v816_v19 = vld [vmem:[%s939_s25 + $0x20] sm:$0xff]   ;;  %v820_v23 = vld [vmem:[%s939_s25 + $0x28] sm:$0xff]  }
  0x1f   : > { %724 = vmatpush3.bf16.msra.mxu0 %v804_v7  ;;  %v813_v16 = vld [vmem:[%s939_s25 + $0x98] sm:$0xff]   ;;  %v817_v20 = vld [vmem:[%s939_s25 + $0xa0] sm:$0xff]   ;;  %v821_v24 = vld [vmem:[%s939_s25 + $0xa8] sm:$0xff]  }
  0x20   : > { %746 = vmatpush3.bf16.msra.mxu1 %v805_v8  ;;  %725 = vmatprep.subr.bf16.mxu0 %v806_v9  ;;  %v822_v25 = vld [vmem:[%s939_s25 + $0x70] sm:$0xff]   ;;  %v826_v29 = vld [vmem:[%s939_s25 + $0x78] sm:$0xff]   ;;  %v682_v34 = vld.sshfl [vmem:[%s201_s21] sm:$0x33 pattern:$0x75316420] }
  0x21   : > { %747 = vmatprep.subr.bf16.mxu1 %v807_v10  ;;  %v823_v26 = vld [vmem:[%s939_s25 + $0xf0] sm:$0xff]   ;;  %v827_v30 = vld [vmem:[%s939_s25 + $0xf8] sm:$0xff]   ;;  %v290_v38 = vcombine.high %v682_v34, %v682_v34  ;;  %v297_v42 = vrot.slane %v682_v34, %v296_v40  ;;  %v216_v54 = vld [vmem:[#allocation2] sm:$0x3] }
  0x22   : > { %v824_v27 = vld [vmem:[%s939_s25 + $0x30] sm:$0xff]   ;;  %v828_v32 = vld [vmem:[%s939_s25 + $0x38] sm:$0xff]   ;;  %v716_v59 = vld [vmem:[%s1022_s2] ss:$0 sm:$0xff] (!%p715_p7) }
  0x23   : > { %726 = vmatpush3.bf16.msra.mxu0 %v808_v11  ;;  %v825_v28 = vld [vmem:[%s939_s25 + $0xb0] sm:$0xff]   ;;  %v829_v33 = vld [vmem:[%s939_s25 + $0xb8] sm:$0xff]   ;;  %v304_v41 = vrot.slane %v290_v38, %v296_v40  ;;  %v305_v44 = vcombine.high %v297_v42, %v297_v42 }
  0x24   : > { %748 = vmatpush3.bf16.msra.mxu1 %v809_v12  ;;  %727 = vmatprep.subr.bf16.mxu0 %v810_v13 }
  0x25   : > { %749 = vmatprep.subr.bf16.mxu1 %v811_v14  ;;  %535 = vmatprep.mubr.bf16.mxu0 %v304_v41  ;;  %v306_v43 = vcombine.high %v304_v41, %v304_v41 }
  0x27   : > { %728 = vmatpush3.bf16.msra.mxu0 %v812_v15  ;;  %575 = vmatprep.mubr.bf16.mxu1 %v306_v43 }
  0x28   : > { %750 = vmatpush3.bf16.msra.mxu1 %v813_v16  ;;  %729 = vmatprep.subr.bf16.mxu0 %v814_v17 }
  0x29   : > { %751 = vmatprep.subr.bf16.mxu1 %v815_v18 }
  0x2b   : > { %730 = vmatpush3.bf16.msra.mxu0 %v816_v19 }
  0x2c   : > { %752 = vmatpush3.bf16.msra.mxu1 %v817_v20  ;;  %731 = vmatprep.subr.bf16.mxu0 %v818_v21 }
  0x2d   : > { %753 = vmatprep.subr.bf16.mxu1 %v819_v22 }
  0x2f   : > { %732 = vmatpush3.bf16.msra.mxu0 %v820_v23 }
  0x30   : > { %754 = vmatpush3.bf16.msra.mxu1 %v821_v24  ;;  %733 = vmatprep.subr.bf16.mxu0 %v822_v25 }
  0x31   : > { %755 = vmatprep.subr.bf16.mxu1 %v823_v26 }
  0x33   : > { %734 = vmatpush3.bf16.msra.mxu0 %v824_v27 }
  0x34   : > { %756 = vmatpush3.bf16.msra.mxu1 %v825_v28  ;;  %735 = vmatprep.subr.bf16.mxu0 %v826_v29 }
  0x35   : > { %757 = vmatprep.subr.bf16.mxu1 %v827_v30 }
  0x37   : > { %736 = vmatpush3.bf16.msra.mxu0 %v828_v32 }
  0x38   : > { %758 = vmatpush3.bf16.msra.mxu1 %v829_v33 }
  0x3a   : > { %536 = vmatmul.mubr.bf16.vlgmr.msra.gmra.mrb[0].mxu0 %v297_v42 }
  0x3b   : > { %576 = vmatmul.mubr.bf16.vlgmr.msra.gmra.mrb[0].mxu1 %v305_v44 }
 0x10d   : > { %v737_v45 = vpop.f32.mrb[0].mxu0 }
 0x10e   : > { %v738_v46 = vpop.f32.mrb[1].mxu0  ;;  %v759_v47 = vpop.f32.mrb[0].mxu1 }
 0x10f   : > { %v739_v48 = vadd.f32 %v738_v46, %v737_v45  ;;  %v740_v49 = vpop.f32.mrb[2].mxu0  ;;  %v760_v50 = vpop.f32.mrb[1].mxu1 }
 0x110   : > { %v741_v51 = vpop.f32.mrb[3].mxu0  ;;  %v761_v52 = vadd.f32 %v760_v50, %v759_v47  ;;  %v762_v53 = vpop.f32.mrb[2].mxu1  ;;  %589 = sbr.rel (%p715_p7) target bundleno = 289 (0x121), region = 40 }
 0x111   : > { %v763_v55 = vpop.f32.mrb[3].mxu1 }
 0x112   : > { %v578_v56 = vadd.f32 %v761_v52, %v739_v48 }
 0x114   : > { %v583_v57 = vadd.f32 %v578_v56, %v216_v54 }
 0x116   : > { %585 = vst.msk [vmem:[#allocation2] sm:$0x3] %vm584_vm1, %v583_v57 }
 0x11d   : > { %v590_v58 = vld [vmem:[#allocation2] sm:$0x3] }
 0x11e   : > { %v598_v60 = vadd.f32 %v716_v59, %v590_v58 }
 0x120   : > { %599 = vst.msk [vmem:[#allocation3] sm:$0x3] %vm584_vm1, %v598_v60 }
 0x121 PF: > { %p985_p8 = scmp.eq.s32.totalorder %s674_s15, 1  ;;  %s886_s4 = smov [#allocation3]  }
 0x122   : > { %s609_s5 = sshll.u32 %s886_s4, 4  ;;  %s610_s5 = int_to_ptr.vmem [resolvable:$true] %s609_s5 }
 0x123   : > { %s830_s6 = scalar_lea.vmem %s610_s5, 32  ;;  %p837_p12 = scmp.lt.s32.totalorder %s610_s5, %s610_s5 }
 0x124   : > { %p831_p9 = scmp.ne.s32.totalorder %s610_s5, %s830_s6  ;;  %p838_p13 = scmp.lt.s32.totalorder %s830_s6, %s830_s6 }
 0x126   : > { %p832_p10 = pnand %p831_p9, %p985_p8  ;;  %p839_p0 = por %p838_p13, %p837_p12 }
 0x128   : > { %p833_p11 = pneg %p832_p10 }
 0x12a   : > { %p840_p1 = pnand %p839_p0, %p833_p11 }
 0x12c   : > { %843 = shalt.err (!%p840_p1)
}
 0x12d   : > { %s844_s9 = scalar_lea.hbm %s1023_s3, 32 }
 0x12e   : > { %p845_p2 = scmp.ne.s32.totalorder %s1023_s3, %s844_s9  ;;  %p850_p5 = scmp.lt.u32.totalorder %s844_s9, %s1023_s3 }
 0x130   : > { %p846_p3 = pnand %p845_p2, %p985_p8 }
 0x132   : > { %p847_p4 = pneg %p846_p3 }
 0x134   : > { %p852_p6 = pnand %p850_p5, %p847_p4 }
 0x136   : > { %855 = shalt.err (!%p852_p6)
}
 0x137   : > { %766 = dma.vmem_to_hbm [thread:$0]  (%p985_p8), %s610_s5, 32, %s1023_s3, [#allocation4]  }
 0x138   : > { %869 = dma.done.wait (%p985_p8), [#allocation4], 32  }
 0x139   : > { %871 = vsyncadd (%p985_p8), [#allocation4], 4294967264 }
 0x13a PF: > { %s14_s14 = sadd.s32 1, %s882_s14   ;;  %s1025_s12 = smov %s878_s13 }
 0x13b   : > { %p11_p7 = scmp.ge.s32.totalorder %s14_s14, 4   ;;  %s1026_s13 = smov %s1028_s16 }
 0x13d   :  { %13 = sbr.rel (!%p11_p7) target bundleno = 2 (0x2), region = 71 }
 0x144   :  { %622 = vsyncpa [#allocation4], 1 }
 0x145   :  { %624 = vsyncpa [#allocation4 + $0x1], 1 }

</bundles_post_ra>
